<compile_context>
chip_gen: v6e
topology: v6e:2x2x1
jax: 0.10.0
libtpu: 0.0.40
codegen_flags: <defaults>
</compile_context>

<pallas_src>
import functools

import jax
import jax.numpy as jnp
from jax.experimental import pallas as pl
from jax.experimental.pallas import tpu as pltpu


def _sigmoid(x):
    # One EUP op (tanh) instead of exp + reciprocal; stable for all x.
    return 0.5 * (jnp.tanh(0.5 * x) + 1.0)


# ---------------- fused YOLO decode kernel ----------------
def _yolo_decode_kernel(p_ref, gxy_ref, anc_ref, io_ref, *, stride):
    """Decode one (image, hw-tile) block.

    p_ref/io_ref: (1, na, no, T)  -- T on lanes (multiple of 128 or full hw)
    gxy_ref:      (2, T)          -- grid-cell x/y offsets for this hw tile
    anc_ref:      (na, 2, 1)      -- anchor sizes in pixels (= anchor_vec*stride)
    """
    xy_in = p_ref[0, :, 0:2, :].astype(jnp.float32)          # (na, 2, T)
    wh_in = p_ref[0, :, 2:4, :].astype(jnp.float32)          # (na, 2, T)
    cf_in = p_ref[0, :, 4:, :].astype(jnp.float32)           # (na, no-4, T)

    xy = (_sigmoid(xy_in) + gxy_ref[...]) * stride           # (2,T) bcast over na
    wh = jnp.exp(wh_in) * anc_ref[...]                       # (na,2,1) bcast over T
    cf = _sigmoid(cf_in)

    io_ref[0, :, 0:2, :] = xy.astype(io_ref.dtype)
    io_ref[0, :, 2:4, :] = wh.astype(io_ref.dtype)
    io_ref[0, :, 4:, :] = cf.astype(io_ref.dtype)


def _pick_hw_tile(hw, row_bytes, want_min_tiles=1):
    """Largest multiple-of-128 divisor of hw whose block stays well inside VMEM,
    split further when >=2 grid steps are wanted (v7x megacore with bs == 1)."""
    if hw % 128 != 0:
        return hw                                            # full-extent block is legal
    divs = [t for t in range(128, hw + 1, 128) if hw % t == 0]
    fit = [t for t in divs if t * row_bytes <= (1 << 20)] or [divs[0]]
    tile = max(fit)
    if want_min_tiles > 1:
        split = [t for t in divs if hw // t >= want_min_tiles and t <= tile]
        if split:
            tile = max(split)
    return tile


# ---------------- wrapper (YOLOLayer.forward) ----------------
def yolo_layer_forward(p, anchors, img_size, training=False):
    """JAX/Pallas equivalent of YOLOLayer.forward(p, img_size).

    p:       (bs, na*no, ny, nx) raw conv output (native dtype, no upcast)
    anchors: (na, 2) anchor sizes in pixels
    returns (io.view(bs, -1, no), p_permuted) in eval mode, p_permuted in training.
    """
    bs, ch, ny, nx = p.shape
    na = int(anchors.shape[0])
    no = ch // na
    hw = ny * nx

    # p.view(bs, na, no, ny, nx).permute(0, 1, 3, 4, 2) -- pure layout, left to XLA.
    p_perm = p.reshape(bs, na, no, ny, nx).transpose(0, 1, 3, 4, 2)
    if training:
        return p_perm

    stride = float(max(img_size)) / float(max(nx, ny))

    # Per-position grid offsets (x, y) -- only 2*hw floats.
    yv, xv = jnp.meshgrid(jnp.arange(ny), jnp.arange(nx), indexing="ij")
    gxy = jnp.stack([xv.reshape(-1), yv.reshape(-1)], axis=0).astype(jnp.float32)  # (2, hw)
    # io[..., 2:4] = exp * anchor_vec * stride = exp * anchors (pixels).
    anc = anchors.astype(jnp.float32).reshape(na, 2, 1)

    p_flat = p.reshape(bs, na, no, hw)            # free reshape, native dtype

    itemsize = jnp.dtype(p.dtype).itemsize
    tile = _pick_hw_tile(hw, row_bytes=na * no * itemsize,
                         want_min_tiles=2 if bs == 1 else 1)
    n_hw = hw // tile

    elems = bs * na * no * hw
    io_flat = pl.pallas_call(
        functools.partial(_yolo_decode_kernel, stride=stride),
        out_shape=jax.ShapeDtypeStruct((bs, na, no, hw), p.dtype),
        grid=(bs, n_hw),
        in_specs=[
            pl.BlockSpec((1, na, no, tile), lambda b, h: (b, 0, 0, h)),
            pl.BlockSpec((2, tile), lambda b, h: (0, h)),
            pl.BlockSpec((na, 2, 1), lambda b, h: (0, 0, 0)),
        ],
        out_specs=pl.BlockSpec((1, na, no, tile), lambda b, h: (b, 0, 0, h)),
        compiler_params=pltpu.CompilerParams(
            dimension_semantics=("parallel", "parallel")),
        cost_estimate=pl.CostEstimate(
            flops=5 * elems,
            transcendentals=elems,                       # ~1 EUP op per element
            bytes_accessed=2 * itemsize * elems + 4 * (2 * hw + 2 * na)),
    )(p_flat, gxy, anc)

    # io.view(bs, -1, no): [a, o, y, x] -> [a, y, x, o] -> (bs, na*ny*nx, no).
    # TODO(synk): a downstream consumer (box filter / NMS) could read the
    # channel-major (bs, na, no, hw) kernel output directly and skip this extra
    # full-HBM permute pass (and skip p_perm entirely if unused in eval).
    io = (io_flat.reshape(bs, na, no, ny, nx)
                 .transpose(0, 1, 3, 4, 2)
                 .reshape(bs, na * hw, no))
    return io, p_perm


# ---------------- pure-JAX reference (mirrors the PyTorch module) ----------------
def yolo_layer_reference(p, anchors, img_size):
    bs, ch, ny, nx = p.shape
    na = int(anchors.shape[0])
    no = ch // na
    stride = float(max(img_size)) / float(max(nx, ny))
    yv, xv = jnp.meshgrid(jnp.arange(ny), jnp.arange(nx), indexing="ij")
    grid_xy = jnp.stack((xv, yv), axis=2).astype(jnp.float32).reshape(1, 1, ny, nx, 2)
    anchor_wh = (anchors.astype(jnp.float32) / stride).reshape(1, na, 1, 1, 2)
    pp = p.astype(jnp.float32).reshape(bs, na, no, ny, nx).transpose(0, 1, 3, 4, 2)
    xy = (jax.nn.sigmoid(pp[..., :2]) + grid_xy) * stride
    wh = jnp.exp(pp[..., 2:4]) * anchor_wh * stride
    rest = jax.nn.sigmoid(pp[..., 4:])
    io = jnp.concatenate([xy, wh, rest], axis=-1)
    return io.reshape(bs, -1, no), pp


if __name__ == "__main__":
    NA, NO = 6, 6
    NY = NX = 16
    BS = 2
    IMG_SIZE = (256, 256)            # stride = 256 / 16 = 16

    key = jax.random.PRNGKey(0)
    kp, _ = jax.random.split(key)
    p_in = jax.random.normal(kp, (BS, NA * NO, NY, NX), jnp.float32)
    anchors = jnp.array([[10., 13.], [16., 30.], [33., 23.],
                         [30., 61.], [62., 45.], [59., 119.]], jnp.float32)

    fwd = jax.jit(functools.partial(yolo_layer_forward, img_size=IMG_SIZE))
    io, p_out = fwd(p_in, anchors)
    jax.block_until_ready((io, p_out))

    assert io.shape == (BS, NA * NY * NX, NO), io.shape
    assert p_out.shape == (BS, NA, NY, NX, NO), p_out.shape

    io_ref, p_ref = yolo_layer_reference(p_in, anchors, IMG_SIZE)
    assert jnp.array_equal(p_out, p_ref)
    assert bool(jnp.allclose(io, io_ref, rtol=1e-4, atol=1e-4)), \
        float(jnp.max(jnp.abs(io - io_ref)))
    assert bool(jnp.all(jnp.isfinite(io)))
    print("KERNEL_OK")
</pallas_src>

<mosaic_0001>
module attributes {stable_mosaic.version = 11 : i64} {
  func.func @_yolo_decode_kernel(%arg0: i32, %arg1: i32, %arg2: memref<1x6x6x256xf32, #tpu.memory_space<vmem>>, %arg3: memref<2x256xf32, #tpu.memory_space<vmem>>, %arg4: memref<6x2x1xf32, #tpu.memory_space<vmem>>, %arg5: memref<1x6x6x256xf32, #tpu.memory_space<vmem>>) attributes {dimension_semantics = [#tpu.dimension_semantics<parallel>, #tpu.dimension_semantics<parallel>], iteration_bounds = array<i64: 2, 1>, scalar_prefetch = 0 : i64, scratch_operands = 0 : i64, tpu.core_type = #tpu.core_type<tc>, window_params = [{transform_indices = @transform_0, window_bounds = array<i64: 1, 6, 6, 256>}, {transform_indices = @transform_1, window_bounds = array<i64: 2, 256>}, {pipeline_mode = #tpu.pipeline_mode<synchronous>, transform_indices = @transform_2, window_bounds = array<i64: 6, 2, 1>}, {transform_indices = @transform_3, window_bounds = array<i64: 1, 6, 6, 256>}]} {
    %c0 = arith.constant 0 : index
    %c0_0 = arith.constant 0 : index
    %c0_1 = arith.constant 0 : index
    %c0_2 = arith.constant 0 : index
    %0 = vector.load %arg2[%c0, %c0_0, %c0_1, %c0_2] : memref<1x6x6x256xf32, #tpu.memory_space<vmem>>, vector<1x6x2x256xf32>
    %1 = vector.shape_cast %0 : vector<1x6x2x256xf32> to vector<6x2x256xf32>
    %c0_3 = arith.constant 0 : index
    %c0_4 = arith.constant 0 : index
    %c2 = arith.constant 2 : index
    %c0_5 = arith.constant 0 : index
    %2 = vector.load %arg2[%c0_3, %c0_4, %c2, %c0_5] : memref<1x6x6x256xf32, #tpu.memory_space<vmem>>, vector<1x6x2x256xf32>
    %3 = vector.shape_cast %2 : vector<1x6x2x256xf32> to vector<6x2x256xf32>
    %c0_6 = arith.constant 0 : index
    %c0_7 = arith.constant 0 : index
    %c4 = arith.constant 4 : index
    %c0_8 = arith.constant 0 : index
    %4 = vector.load %arg2[%c0_6, %c0_7, %c4, %c0_8] : memref<1x6x6x256xf32, #tpu.memory_space<vmem>>, vector<1x6x2x256xf32>
    %5 = vector.shape_cast %4 : vector<1x6x2x256xf32> to vector<6x2x256xf32>
    %cst = arith.constant 5.000000e-01 : f32
    %6 = vector.broadcast %cst : f32 to vector<6x2x256xf32>
    %7 = arith.mulf %6, %1 : vector<6x2x256xf32>
    %8 = math.tanh %7 : vector<6x2x256xf32>
    %cst_9 = arith.constant 1.000000e+00 : f32
    %9 = vector.broadcast %cst_9 : f32 to vector<6x2x256xf32>
    %10 = arith.addf %8, %9 : vector<6x2x256xf32>
    %cst_10 = arith.constant 5.000000e-01 : f32
    %11 = vector.broadcast %cst_10 : f32 to vector<6x2x256xf32>
    %12 = arith.mulf %11, %10 : vector<6x2x256xf32>
    %c0_11 = arith.constant 0 : index
    %c0_12 = arith.constant 0 : index
    %13 = vector.load %arg3[%c0_11, %c0_12] : memref<2x256xf32, #tpu.memory_space<vmem>>, vector<2x256xf32>
    %14 = vector.shape_cast %13 : vector<2x256xf32> to vector<1x2x256xf32>
    %15 = vector.broadcast %14 : vector<1x2x256xf32> to vector<6x2x256xf32>
    %16 = arith.addf %12, %15 : vector<6x2x256xf32>
    %cst_13 = arith.constant 1.600000e+01 : f32
    %17 = vector.broadcast %cst_13 : f32 to vector<6x2x256xf32>
    %18 = arith.mulf %16, %17 : vector<6x2x256xf32>
    %19 = math.exp %3 : vector<6x2x256xf32>
    %c0_14 = arith.constant 0 : index
    %c0_15 = arith.constant 0 : index
    %c0_16 = arith.constant 0 : index
    %20 = vector.load %arg4[%c0_14, %c0_15, %c0_16] : memref<6x2x1xf32, #tpu.memory_space<vmem>>, vector<6x2x1xf32>
    %21 = vector.broadcast %20 : vector<6x2x1xf32> to vector<6x2x256xf32>
    %22 = arith.mulf %19, %21 : vector<6x2x256xf32>
    %cst_17 = arith.constant 5.000000e-01 : f32
    %23 = vector.broadcast %cst_17 : f32 to vector<6x2x256xf32>
    %24 = arith.mulf %23, %5 : vector<6x2x256xf32>
    %25 = math.tanh %24 : vector<6x2x256xf32>
    %cst_18 = arith.constant 1.000000e+00 : f32
    %26 = vector.broadcast %cst_18 : f32 to vector<6x2x256xf32>
    %27 = arith.addf %25, %26 : vector<6x2x256xf32>
    %cst_19 = arith.constant 5.000000e-01 : f32
    %28 = vector.broadcast %cst_19 : f32 to vector<6x2x256xf32>
    %29 = arith.mulf %28, %27 : vector<6x2x256xf32>
    %c0_20 = arith.constant 0 : index
    %c0_21 = arith.constant 0 : index
    %c0_22 = arith.constant 0 : index
    %c0_23 = arith.constant 0 : index
    %30 = vector.load %arg5[%c0_20, %c0_21, %c0_22, %c0_23] : memref<1x6x6x256xf32, #tpu.memory_space<vmem>>, vector<1x6x2x256xf32>
    %31 = vector.shape_cast %30 : vector<1x6x2x256xf32> to vector<6x2x256xf32>
    %32 = vector.shape_cast %18 : vector<6x2x256xf32> to vector<1x6x2x256xf32>
    tpu.vector_store %arg5[%c0_20, %c0_21, %c0_22, %c0_23], %32 {strides = array<i32>} : memref<1x6x6x256xf32, #tpu.memory_space<vmem>>, vector<1x6x2x256xf32>,
    %c0_24 = arith.constant 0 : index
    %c0_25 = arith.constant 0 : index
    %c2_26 = arith.constant 2 : index
    %c0_27 = arith.constant 0 : index
    %33 = vector.load %arg5[%c0_24, %c0_25, %c2_26, %c0_27] : memref<1x6x6x256xf32, #tpu.memory_space<vmem>>, vector<1x6x2x256xf32>
    %34 = vector.shape_cast %33 : vector<1x6x2x256xf32> to vector<6x2x256xf32>
    %35 = vector.shape_cast %22 : vector<6x2x256xf32> to vector<1x6x2x256xf32>
    tpu.vector_store %arg5[%c0_24, %c0_25, %c2_26, %c0_27], %35 {strides = array<i32>} : memref<1x6x6x256xf32, #tpu.memory_space<vmem>>, vector<1x6x2x256xf32>,
    %c0_28 = arith.constant 0 : index
    %c0_29 = arith.constant 0 : index
    %c4_30 = arith.constant 4 : index
    %c0_31 = arith.constant 0 : index
    %36 = vector.load %arg5[%c0_28, %c0_29, %c4_30, %c0_31] : memref<1x6x6x256xf32, #tpu.memory_space<vmem>>, vector<1x6x2x256xf32>
    %37 = vector.shape_cast %36 : vector<1x6x2x256xf32> to vector<6x2x256xf32>
    %38 = vector.shape_cast %29 : vector<6x2x256xf32> to vector<1x6x2x256xf32>
    tpu.vector_store %arg5[%c0_28, %c0_29, %c4_30, %c0_31], %38 {strides = array<i32>} : memref<1x6x6x256xf32, #tpu.memory_space<vmem>>, vector<1x6x2x256xf32>,
    return
  }
  func.func @transform_0(%arg0: i32, %arg1: i32) -> (i32, i32, i32, i32) {
    %c0_i32 = arith.constant 0 : i32
    %c0_i32_0 = arith.constant 0 : i32
    %c0_i32_1 = arith.constant 0 : i32
    return %arg0, %c0_i32, %c0_i32_0, %arg1 : i32, i32, i32, i32
  }
  func.func @transform_1(%arg0: i32, %arg1: i32) -> (i32, i32) {
    %c0_i32 = arith.constant 0 : i32
    %c0_i32_0 = arith.constant 0 : i32
    return %c0_i32, %arg1 : i32, i32
  }
  func.func @transform_2(%arg0: i32, %arg1: i32) -> (i32, i32, i32) {
    %c0_i32 = arith.constant 0 : i32
    %c0_i32_0 = arith.constant 0 : i32
    %c0_i32_1 = arith.constant 0 : i32
    %c0_i32_2 = arith.constant 0 : i32
    return %c0_i32, %c0_i32_0, %c0_i32_1 : i32, i32, i32
  }
  func.func @transform_3(%arg0: i32, %arg1: i32) -> (i32, i32, i32, i32) {
    %c0_i32 = arith.constant 0 : i32
    %c0_i32_0 = arith.constant 0 : i32
    %c0_i32_1 = arith.constant 0 : i32
    return %arg0, %c0_i32, %c0_i32_0, %arg1 : i32, i32, i32, i32
  }
}

</mosaic_0001>

<bundles_post_ra>
// kernel: yolo_layer_forward.1
= control target key start
LH: loop header
LB: loop body
LE: loop exit
PB: predicated region body
PF: predicated region fallthrough
CT: control target
= control target key end

     0   :  { %s772_s12 = smov 0   ;;  %s774_s13 = smov 0   ;;  %s945_s0 = inlined_call_operand.vmem [shape: f32[2,6,6,256], index: 0, kind: input, shape index: {}]   ;;  %s946_s1 = inlined_call_operand.vmem [shape: f32[2,256], index: 1, kind: input, shape index: {}]   ;;  %s947_s2 = inlined_call_operand.vmem [shape: f32[6,2,1], index: 2, kind: input, shape index: {}]   ;;  %s948_s3 = inlined_call_operand.vmem [shape: f32[2,6,6,256], index: 3, kind: output, shape index: {}]  }
   0x1   :  { %s776_s14 = smov 0  }
   0x2 LB: > { %s25_s15 = sadd.s32 1, %s745_s13  ;;  %p621_p0 = scmp.ge.s32.totalorder %s749_s14, 1  ;;  %s749_s14 = sphi %s776_s14, %s13_s14   ;;  %s745_s13 = sphi %s774_s13, %s950_s13   ;;  %s741_s12 = sphi %s772_s12, %s949_s12  }
   0x3   : > { %p27_p1 = scmp.ge.s32.totalorder %s25_s15, 2  ;;  %p169_p2 = scmp.lt.s32.totalorder %s749_s14, 3 }
   0x5   : > { %s952_s15 = smov (%p27_p1, %s25_s15), 0  ;;  %p170_p3 = pnand %p621_p0, %p169_p2 }
   0x6   : > { %p207_p4 = scmp.lt.s32.totalorder (!%p170_p3), %s741_s12, 1 }
   0x7   : > { %173 = sbr.rel (%p170_p3) target bundleno = 152 (0x98), region = 32 }
   0xc   : > { %v378_v0 = vld [vmem:[%s947_s2 + $0x4] sm:$0x3]  ;;  %v376_v1 = vld [vmem:[%s947_s2] sm:$0x3]  ;;  %v751_v2 = vmov 0   ;;  %s954_s12 = smov (!%p207_p4, %s741_s12), 1 }
   0xd   : > { %654 = vset.pattern.permute.xlu1 %v751_v2  ;;  %653 = vset.pattern.permute.xlu0 %v751_v2  ;;  %v379_v3 = vld [vmem:[%s947_s2 + $0x6] sm:$0x3]  ;;  %v377_v4 = vld [vmem:[%s947_s2 + $0x2] sm:$0x3]  ;;  %v381_v5 = vld [vmem:[%s947_s2 + $0xa] sm:$0x3] }
   0xe   : > { %392 = vperm.xlu1 %654, %v378_v0   ;;  %384 = vperm.xlu0 %653, %v376_v1   ;;  %v380_v6 = vld [vmem:[%s947_s2 + $0x8] sm:$0x3]  ;;  %s627_s28 = smul.u32 96, %s954_s12 }
   0xf   : > { %v835_v33 = vld.sshfl [vmem:[%s946_s1] sm:$0x33 pattern:$0x76325410] }
  0x10   : > { %s816_s4 = scalar_lea.vmem %s945_s0, %s627_s28  ;;  %v848_v47 = vcombine.high %v835_v33, %v835_v33  ;;  %s871_s9 = scalar_lea.vmem %s948_s3, %s627_s28 }
  0x11   : > { %v232_v7 = vld [vmem:[%s816_s4] sm:$0x3]  ;;  %v233_v8 = vld [vmem:[%s816_s4 + $0x8] sm:$0x3]  ;;  %v234_v9 = vld [vmem:[%s816_s4 + $0x10] sm:$0x3] }
  0x12   : > { %396 = vperm.xlu1 %654, %v379_v3   ;;  %388 = vperm.xlu0 %653, %v377_v4   ;;  %v235_v10 = vld [vmem:[%s816_s4 + $0x18] sm:$0x3]  ;;  %v236_v11 = vld [vmem:[%s816_s4 + $0x20] sm:$0x3]  ;;  %v268_v12 = vmul.f32 0.5, %v232_v7  ;;  %v269_v13 = vmul.f32 0.5, %v233_v8 }
  0x13   : > { %v237_v14 = vld [vmem:[%s816_s4 + $0x28] sm:$0x3]  ;;  %v270_v15 = vmul.f32 0.5, %v234_v9  ;;  %v238_v16 = vld [vmem:[%s816_s4 + $0x30] sm:$0x3]  ;;  %v271_v17 = vmul.f32 0.5, %v235_v10 }
  0x14   : > { %v239_v18 = vld [vmem:[%s816_s4 + $0x38] sm:$0x3]  ;;  %v272_v19 = vmul.f32 0.5, %v236_v11  ;;  %655 = vtanh.f32 %v268_v12  ;;  %v240_v20 = vld [vmem:[%s816_s4 + $0x40] sm:$0x3]  ;;  %v273_v21 = vmul.f32 0.5, %v237_v14 }
  0x15   : > { %657 = vtanh.f32 %v269_v13  ;;  %v241_v22 = vld [vmem:[%s816_s4 + $0x48] sm:$0x3]  ;;  %v274_v23 = vmul.f32 0.5, %v238_v16  ;;  %v242_v24 = vld [vmem:[%s816_s4 + $0x50] sm:$0x3]  ;;  %v275_v25 = vmul.f32 0.5, %v239_v18 }
  0x16   : > { %404 = vperm.xlu1 %654, %v381_v5   ;;  %400 = vperm.xlu0 %653, %v380_v6   ;;  %659 = vtanh.f32 %v270_v15  ;;  %v243_v26 = vld [vmem:[%s816_s4 + $0x58] sm:$0x3]  ;;  %v276_v27 = vmul.f32 0.5, %v240_v20  ;;  %v277_v28 = vmul.f32 0.5, %v241_v22  ;;  %v278_v29 = vmul.f32 0.5, %v242_v24 }
  0x17   : > { %661 = vtanh.f32 %v271_v17  ;;  %v256_v30 = vld [vmem:[%s816_s4] sm:$0x30]  ;;  %v279_v31 = vmul.f32 0.5, %v243_v26  ;;  %v257_v32 = vld [vmem:[%s816_s4 + $0x8] sm:$0x30] }
  0x18   : > { %663 = vtanh.f32 %v272_v19  ;;  %v258_v34 = vld [vmem:[%s816_s4 + $0x10] sm:$0x30]  ;;  %v259_v35 = vld [vmem:[%s816_s4 + $0x18] sm:$0x30]  ;;  %v260_v36 = vld [vmem:[%s816_s4 + $0x20] sm:$0x30] }
  0x19   : > { %665 = vtanh.f32 %v273_v21  ;;  %v261_v37 = vld [vmem:[%s816_s4 + $0x28] sm:$0x30]  ;;  %v430_v38 = vmul.f32 0.5, %v256_v30  ;;  %v262_v39 = vld [vmem:[%s816_s4 + $0x30] sm:$0x30]  ;;  %v431_v41 = vmul.f32 0.5, %v257_v32 }
  0x1a   : > { %667 = vtanh.f32 %v274_v23  ;;  %v263_v40 = vld [vmem:[%s816_s4 + $0x38] sm:$0x30]  ;;  %v264_v42 = vld [vmem:[%s816_s4 + $0x40] sm:$0x30]  ;;  %v265_v43 = vld [vmem:[%s816_s4 + $0x48] sm:$0x30] }
  0x1b   : > { %669 = vtanh.f32 %v275_v25  ;;  %v432_v44 = vmul.f32 0.5, %v258_v34  ;;  %v266_v46 = vld [vmem:[%s816_s4 + $0x50] sm:$0x30]  ;;  %v433_v48 = vmul.f32 0.5, %v259_v35  ;;  %v434_v49 = vmul.f32 0.5, %v260_v36 }
  0x1c   : > { %671 = vtanh.f32 %v276_v27  ;;  %v435_v50 = vmul.f32 0.5, %v261_v37  ;;  %v267_v52 = vld [vmem:[%s816_s4 + $0x58] sm:$0x30]  ;;  %v851_v54 = vmul.f32 0.5, %v262_v39  ;;  %v853_v55 = vmul.f32 0.5, %v263_v40 }
  0x1d   : > { %673 = vtanh.f32 %v277_v28  ;;  %v855_v58 = vmul.f32 0.5, %v264_v42  ;;  %v857_v59 = vmul.f32 0.5, %v265_v43  ;;  %v859_v63 = vmul.f32 0.5, %v266_v46 }
  0x1e   : > { %675 = vtanh.f32 %v278_v29  ;;  %v861_v3 = vmul.f32 0.5, %v267_v52 }
  0x1f   : > { %677 = vtanh.f32 %v279_v31 }
  0x20   : > { %679 = vtanh.f32 %v430_v38 }
  0x21   : > { %v656_v45 = vpop.eup %655  ;;  %681 = vtanh.f32 %v431_v41 }
  0x22   : > { %v658_v51 = vpop.eup %657  ;;  %v292_v53 = vadd.f32 1.0, %v656_v45  ;;  %683 = vtanh.f32 %v432_v44 }
  0x23   : > { %v660_v56 = vpop.eup %659  ;;  %v293_v57 = vadd.f32 1.0, %v658_v51  ;;  %685 = vtanh.f32 %v433_v48 }
  0x24   : > { %v662_v60 = vpop.eup %661  ;;  %v294_v61 = vadd.f32 1.0, %v660_v56  ;;  %v304_v62 = vmul.f32 0.5, %v292_v53  ;;  %687 = vtanh.f32 %v434_v49 }
  0x25   : > { %v664_v0 = vpop.eup %663  ;;  %v295_v1 = vadd.f32 1.0, %v662_v60  ;;  %v305_v2 = vmul.f32 0.5, %v293_v57  ;;  %689 = vtanh.f32 %v435_v50 }
  0x26   : > { %v666_v4 = vpop.eup %665  ;;  %v296_v5 = vadd.f32 1.0, %v664_v0  ;;  %v306_v6 = vmul.f32 0.5, %v294_v61  ;;  %v328_v7 = vadd.f32 %v835_v33, %v304_v62  ;;  %691 = vtanh.f32 %v851_v54 }
  0x27   : > { %v668_v8 = vpop.eup %667  ;;  %v297_v9 = vadd.f32 1.0, %v666_v4  ;;  %v307_v10 = vmul.f32 0.5, %v295_v1  ;;  %v329_v11 = vadd.f32 %v848_v47, %v305_v2  ;;  %693 = vtanh.f32 %v853_v55 }
  0x28   : > { %v670_v12 = vpop.eup %669  ;;  %v298_v13 = vadd.f32 1.0, %v668_v8  ;;  %v308_v14 = vmul.f32 0.5, %v296_v5  ;;  %v330_v15 = vadd.f32 %v835_v33, %v306_v6  ;;  %v340_v16 = vmul.f32 16.0, %v328_v7 }
  0x29   : > { %v672_v17 = vpop.eup %671  ;;  %v299_v18 = vadd.f32 1.0, %v670_v12  ;;  %v309_v19 = vmul.f32 0.5, %v297_v9  ;;  %v331_v20 = vadd.f32 %v848_v47, %v307_v10  ;;  %v341_v21 = vmul.f32 16.0, %v329_v11 }
  0x2a   : > { %v674_v22 = vpop.eup %673  ;;  %v300_v23 = vadd.f32 1.0, %v672_v17  ;;  %v310_v24 = vmul.f32 0.5, %v298_v13  ;;  %v332_v25 = vadd.f32 %v835_v33, %v308_v14  ;;  %v342_v26 = vmul.f32 16.0, %v330_v15  ;;  %478 = vst [vmem:[%s871_s9] sm:$0x3] %v340_v16 }
  0x2b   : > { %v676_v27 = vpop.eup %675  ;;  %v301_v28 = vadd.f32 1.0, %v674_v22  ;;  %v311_v29 = vmul.f32 0.5, %v299_v18  ;;  %v333_v30 = vadd.f32 %v848_v47, %v309_v19  ;;  %v343_v31 = vmul.f32 16.0, %v331_v20  ;;  %479 = vst [vmem:[%s871_s9 + $0x8] sm:$0x3] %v341_v21 }
  0x2c   : > { %v678_v32 = vpop.eup %677  ;;  %v302_v34 = vadd.f32 1.0, %v676_v27  ;;  %v312_v35 = vmul.f32 0.5, %v300_v23  ;;  %v334_v36 = vadd.f32 %v835_v33, %v310_v24  ;;  %v344_v37 = vmul.f32 16.0, %v332_v25  ;;  %480 = vst [vmem:[%s871_s9 + $0x10] sm:$0x3] %v342_v26 }
  0x2d   : > { %v303_v38 = vadd.f32 1.0, %v678_v32  ;;  %v313_v39 = vmul.f32 0.5, %v301_v28  ;;  %v335_v40 = vadd.f32 %v848_v47, %v311_v29  ;;  %v345_v41 = vmul.f32 16.0, %v333_v30  ;;  %481 = vst [vmem:[%s871_s9 + $0x18] sm:$0x3] %v343_v31  ;;  %v680_v45 = vpop.eup %679 }
  0x2e   : > { %v314_v42 = vmul.f32 0.5, %v302_v34  ;;  %v336_v43 = vadd.f32 %v835_v33, %v312_v35  ;;  %v346_v44 = vmul.f32 16.0, %v334_v36  ;;  %482 = vst [vmem:[%s871_s9 + $0x20] sm:$0x3] %v344_v37  ;;  %v682_v50 = vpop.eup %681  ;;  %695 = vtanh.f32 %v855_v58  ;;  %v248_v25 = vld [vmem:[%s816_s4 + $0x20] sm:$0xc] }
  0x2f   : > { %v315_v46 = vmul.f32 0.5, %v303_v38  ;;  %v337_v48 = vadd.f32 %v848_v47, %v313_v39  ;;  %v347_v49 = vmul.f32 16.0, %v335_v40  ;;  %483 = vst [vmem:[%s871_s9 + $0x28] sm:$0x3] %v345_v41  ;;  %v454_v53 = vadd.f32 1.0, %v680_v45  ;;  %v684_v54 = vpop.eup %683 }
  0x30   : > { %v338_v51 = vadd.f32 %v835_v33, %v314_v42  ;;  %v348_v52 = vmul.f32 16.0, %v336_v43  ;;  %484 = vst [vmem:[%s871_s9 + $0x30] sm:$0x3] %v346_v44  ;;  %697 = vtanh.f32 %v857_v59  ;;  %v455_v60 = vadd.f32 1.0, %v682_v50  ;;  %v686_v55 = vpop.eup %685  ;;  %v249_v26 = vld [vmem:[%s816_s4 + $0x28] sm:$0xc] }
  0x31   : > { %v339_v56 = vadd.f32 %v848_v47, %v315_v46  ;;  %v349_v57 = vmul.f32 16.0, %v337_v48  ;;  %485 = vst [vmem:[%s871_s9 + $0x38] sm:$0x3] %v347_v49  ;;  %699 = vtanh.f32 %v859_v63  ;;  %v456_v33 = vadd.f32 1.0, %v684_v54  ;;  %v688_v62 = vpop.eup %687  ;;  %v244_v27 = vld [vmem:[%s816_s4] sm:$0xc] }
  0x32   : > { %v350_v61 = vmul.f32 16.0, %v338_v51  ;;  %v466_v58 = vmul.f32 0.5, %v454_v53  ;;  %486 = vst [vmem:[%s871_s9 + $0x40] sm:$0x3] %v348_v52  ;;  %701 = vtanh.f32 %v861_v3  ;;  %v457_v59 = vadd.f32 1.0, %v686_v55  ;;  %v690_v1 = vpop.eup %689 }
  0x33   : > { %v351_v47 = vmul.f32 16.0, %v339_v56  ;;  %v467_v0 = vmul.f32 0.5, %v455_v60  ;;  %487 = vst [vmem:[%s871_s9 + $0x48] sm:$0x3] %v349_v57  ;;  %v458_v2 = vadd.f32 1.0, %v688_v62  ;;  %v468_v4 = vmul.f32 0.5, %v456_v33  ;;  %v692_v3 = vpop.eup %691 }
  0x34   : > { %488 = vst [vmem:[%s871_s9 + $0x50] sm:$0x3] %v350_v61  ;;  %502 = vst [vmem:[%s871_s9] sm:$0x30] %v466_v58  ;;  %v459_v63 = vadd.f32 1.0, %v690_v1  ;;  %v469_v5 = vmul.f32 0.5, %v457_v59  ;;  %v694_v8 = vpop.eup %693  ;;  %v460_v9 = vadd.f32 1.0, %v692_v3 }
  0x35   : > { %489 = vst [vmem:[%s871_s9 + $0x58] sm:$0x3] %v351_v47  ;;  %503 = vst [vmem:[%s871_s9 + $0x8] sm:$0x30] %v467_v0  ;;  %v470_v6 = vmul.f32 0.5, %v458_v2  ;;  %v461_v11 = vadd.f32 1.0, %v694_v8 }
  0x36   : > { %504 = vst [vmem:[%s871_s9 + $0x10] sm:$0x30] %v468_v4  ;;  %v471_v7 = vmul.f32 0.5, %v459_v63  ;;  %505 = vst [vmem:[%s871_s9 + $0x18] sm:$0x30] %v469_v5  ;;  %v472_v14 = vmul.f32 0.5, %v460_v9 }
  0x37   : > { %506 = vst [vmem:[%s871_s9 + $0x20] sm:$0x30] %v470_v6  ;;  %v473_v17 = vmul.f32 0.5, %v461_v11  ;;  %v360_v28 = vmul.f32 1.442695, %v248_v25 }
  0x38   : > { %507 = vst [vmem:[%s871_s9 + $0x28] sm:$0x30] %v471_v7  ;;  %508 = vst [vmem:[%s871_s9 + $0x30] sm:$0x30] %v472_v14  ;;  %v245_v29 = vld [vmem:[%s816_s4 + $0x8] sm:$0xc] }
  0x39   : > { %509 = vst [vmem:[%s871_s9 + $0x38] sm:$0x30] %v473_v17  ;;  %v362_v30 = vmul.f32 1.442695, %v249_v26  ;;  %v250_v31 = vld [vmem:[%s816_s4 + $0x30] sm:$0xc]  ;;  %703 = vpow2.f32 %v360_v28 }
  0x3a   : > { %v352_v32 = vmul.f32 1.442695, %v244_v27  ;;  %v251_v34 = vld [vmem:[%s816_s4 + $0x38] sm:$0xc]  ;;  %v354_v35 = vmul.f32 1.442695, %v245_v29 }
  0x3b   : > { %v696_v10 = vpop.eup %695  ;;  %v246_v36 = vld [vmem:[%s816_s4 + $0x10] sm:$0xc]  ;;  %v364_v37 = vmul.f32 1.442695, %v250_v31  ;;  %v247_v38 = vld [vmem:[%s816_s4 + $0x18] sm:$0xc]  ;;  %705 = vpow2.f32 %v362_v30 }
  0x3c   : > { %v462_v13 = vadd.f32 1.0, %v696_v10  ;;  %v366_v39 = vmul.f32 1.442695, %v251_v34  ;;  %v254_v40 = vld [vmem:[%s816_s4 + $0x50] sm:$0xc]  ;;  %707 = vpow2.f32 %v352_v32 }
  0x3d   : > { %v698_v12 = vpop.eup %697  ;;  %v356_v41 = vmul.f32 1.442695, %v246_v36  ;;  %v255_v42 = vld [vmem:[%s816_s4 + $0x58] sm:$0xc]  ;;  %709 = vpow2.f32 %v354_v35  ;;  %v358_v43 = vmul.f32 1.442695, %v247_v38 }
  0x3e   : > { %v700_v15 = vpop.eup %699  ;;  %v463_v16 = vadd.f32 1.0, %v698_v12  ;;  %v474_v20 = vmul.f32 0.5, %v462_v13  ;;  %v252_v44 = vld [vmem:[%s816_s4 + $0x40] sm:$0xc]  ;;  %711 = vpow2.f32 %v364_v37  ;;  %v372_v45 = vmul.f32 1.442695, %v254_v40 }
  0x3f   : > { %v702_v18 = vpop.eup %701  ;;  %v464_v19 = vadd.f32 1.0, %v700_v15  ;;  %v253_v46 = vld [vmem:[%s816_s4 + $0x48] sm:$0xc]  ;;  %713 = vpow2.f32 %v366_v39  ;;  %v374_v48 = vmul.f32 1.442695, %v255_v42 }
  0x40   : > { %v465_v21 = vadd.f32 1.0, %v702_v18  ;;  %v475_v22 = vmul.f32 0.5, %v463_v16  ;;  %510 = vst [vmem:[%s871_s9 + $0x40] sm:$0x30] %v474_v20  ;;  %715 = vpow2.f32 %v356_v41  ;;  %v368_v49 = vmul.f32 1.442695, %v252_v44 }
  0x41   : > { %v476_v23 = vmul.f32 0.5, %v464_v19  ;;  %717 = vpow2.f32 %v358_v43  ;;  %v370_v50 = vmul.f32 1.442695, %v253_v46 }
  0x42   : > { %v477_v24 = vmul.f32 0.5, %v465_v21  ;;  %511 = vst [vmem:[%s871_s9 + $0x48] sm:$0x30] %v475_v22  ;;  %719 = vpow2.f32 %v372_v45 }
  0x43   : > { %512 = vst [vmem:[%s871_s9 + $0x50] sm:$0x30] %v476_v23  ;;  %721 = vpow2.f32 %v374_v48 }
  0x44   : > { %513 = vst [vmem:[%s871_s9 + $0x58] sm:$0x30] %v477_v24  ;;  %723 = vpow2.f32 %v368_v49 }
  0x45   : > { %725 = vpow2.f32 %v370_v50 }
  0x46   : > { %v704_v51 = vpop.eup %703 }
  0x48   : > { %v706_v52 = vpop.eup %705 }
  0x49   : > { %v708_v53 = vpop.eup %707 }
  0x4a   : > { %v710_v54 = vpop.eup %709 }
  0x4b   : > { %v712_v60 = vpop.eup %711 }
  0x4c   : > { %v714_v33 = vpop.eup %713 }
  0x4d   : > { %v716_v58 = vpop.eup %715 }
  0x4e   : > { %v718_v1 = vpop.eup %717 }
  0x4f   : > { %v720_v63 = vpop.eup %719 }
  0x50   : > { %v722_v7 = vpop.eup %721 }
  0x51   : > { %v724_v3 = vpop.eup %723 }
  0x52   : > { %v726_v12 = vpop.eup %725 }
  0x89   : > { %v393_v56 = vpop.permute.xlu1 %392  ;;  %v385_v57 = vpop.permute.xlu0 %384 }
  0x8a   : > { %v408_v55 = vrot.slane %v393_v56, 6  ;;  %v406_v61 = vrot.slane %v385_v57, 6 }
  0x8c   : > { %v422_v62 = vmul.f32 %v704_v51, %v408_v55  ;;  %v423_v47 = vmul.f32 %v706_v52, %v408_v55  ;;  %v418_v59 = vmul.f32 %v708_v53, %v406_v61  ;;  %v419_v0 = vmul.f32 %v710_v54, %v406_v61 }
  0x8d   : > { %v397_v2 = vpop.permute.xlu1 %396  ;;  %v389_v4 = vpop.permute.xlu0 %388 }
  0x8e   : > { %494 = vst [vmem:[%s871_s9 + $0x20] sm:$0xc] %v422_v62  ;;  %495 = vst [vmem:[%s871_s9 + $0x28] sm:$0xc] %v423_v47  ;;  %v409_v5 = vrot.slane %v397_v2, 6  ;;  %v407_v6 = vrot.slane %v389_v4, 6 }
  0x8f   : > { %490 = vst [vmem:[%s871_s9] sm:$0xc] %v418_v59  ;;  %491 = vst [vmem:[%s871_s9 + $0x8] sm:$0xc] %v419_v0 }
  0x90   : > { %v424_v8 = vmul.f32 %v712_v60, %v409_v5  ;;  %v425_v9 = vmul.f32 %v714_v33, %v409_v5  ;;  %v420_v10 = vmul.f32 %v716_v58, %v407_v6  ;;  %v421_v11 = vmul.f32 %v718_v1, %v407_v6 }
  0x91   : > { %v405_v13 = vpop.permute.xlu1 %404  ;;  %v401_v14 = vpop.permute.xlu0 %400 }
  0x92   : > { %496 = vst [vmem:[%s871_s9 + $0x30] sm:$0xc] %v424_v8  ;;  %497 = vst [vmem:[%s871_s9 + $0x38] sm:$0xc] %v425_v9  ;;  %v411_v15 = vrot.slane %v405_v13, 6  ;;  %v410_v16 = vrot.slane %v401_v14, 6 }
  0x93   : > { %492 = vst [vmem:[%s871_s9 + $0x10] sm:$0xc] %v420_v10  ;;  %493 = vst [vmem:[%s871_s9 + $0x18] sm:$0xc] %v421_v11 }
  0x94   : > { %v428_v17 = vmul.f32 %v720_v63, %v411_v15  ;;  %v429_v18 = vmul.f32 %v722_v7, %v411_v15  ;;  %v426_v19 = vmul.f32 %v724_v3, %v410_v16  ;;  %v427_v20 = vmul.f32 %v726_v12, %v410_v16 }
  0x96   : > { %500 = vst [vmem:[%s871_s9 + $0x50] sm:$0xc] %v428_v17  ;;  %501 = vst [vmem:[%s871_s9 + $0x58] sm:$0xc] %v429_v18 }
  0x97   : > { %498 = vst [vmem:[%s871_s9 + $0x40] sm:$0xc] %v426_v19  ;;  %499 = vst [vmem:[%s871_s9 + $0x48] sm:$0xc] %v427_v20 }
  0x98 PF: > { %s13_s14 = sadd.s32 1, %s749_s14   ;;  %s949_s12 = smov %s745_s13 }
  0x99   : > { %p10_p5 = scmp.ge.s32.totalorder %s13_s14, 4   ;;  %s950_s13 = smov %s952_s15 }
  0x9b   :  { %12 = sbr.rel (!%p10_p5) target bundleno = 2 (0x2), region = 65 }

</bundles_post_ra>
